<compile_context>
chip_gen: v5e
topology: v5e:2x2
jax: 0.10.0
libtpu: 0.0.40
codegen_flags: <defaults>
</compile_context>

<pallas_src>
from functools import partial

import numpy as np

import jax
import jax.numpy as jnp
from jax import lax
from jax.experimental import pallas as pl
from jax.experimental.pallas import tpu as pltpu


# ----------------------------- Pallas kernel --------------------------------
def _make_cbam_kernel(c_chunk, inv_hw, inv_c, mxu_dtype):
    def kernel(x_ref, w1_ref, b1_ref, w2_ref, b2_ref, mop_ref, cb_ref, o_ref):
        # x_ref / o_ref: (B, C, HW) lane-dense block of images.
        B, C, HW = x_ref.shape
        n_chunks = C // c_chunk
        f32 = jnp.float32

        # ---- Channel gate: per-channel avg/max pools, chunked over C so only
        # ---- a (B, c_chunk, HW) slab is live at a time (bounded vreg use).
        avg_parts, max_parts = [], []
        for ci in range(n_chunks):
            c0 = ci * c_chunk
            xc = x_ref[:, c0:c0 + c_chunk, :].astype(f32)        # (B, CC, HW)
            avg_parts.append(jnp.sum(xc, axis=2) * inv_hw)       # (B, CC)
            max_parts.append(jnp.max(xc, axis=2))                # (B, CC)
        avg = avg_parts[0] if n_chunks == 1 else jnp.concatenate(avg_parts, 1)
        mx = max_parts[0] if n_chunks == 1 else jnp.concatenate(max_parts, 1)

        # ---- Shared MLP on stacked [avg; max]: one fused dot chain, entirely
        # ---- in registers (no VMEM scratch round trips).
        pooled = jnp.concatenate([avg, mx], axis=0).astype(mxu_dtype)  # (2B, C)
        h = jnp.dot(pooled, w1_ref[...], preferred_element_type=f32)
        h = jnp.maximum(h + b1_ref[...], 0.0)                          # (2B, HIDP)
        logits = jnp.dot(h.astype(mxu_dtype), w2_ref[...],
                         preferred_element_type=f32) + b2_ref[...]     # (2B, C)
        att = jax.nn.sigmoid(logits[0:B, :] + logits[B:2 * B, :])      # (B, C)

        # ---- Channel scaling + channel-wise max/mean for the spatial gate.
        # ---- x1 = x * att is stashed straight into o_ref chunk by chunk so
        # ---- the full tile never sits in registers.
        cmax = jnp.full((B, HW), -jnp.inf, dtype=f32)
        csum = jnp.zeros((B, HW), dtype=f32)
        for ci in range(n_chunks):
            c0 = ci * c_chunk
            xc = x_ref[:, c0:c0 + c_chunk, :].astype(f32)
            x1c = xc * att[:, c0:c0 + c_chunk, None]
            o_ref[:, c0:c0 + c_chunk, :] = x1c.astype(o_ref.dtype)
            cmax = jnp.maximum(cmax, jnp.max(x1c, axis=1))
            csum = csum + jnp.sum(x1c, axis=1)
        cmean = csum * inv_c

        # ---- Spatial gate: 7x7 "same" conv(2 -> 1) as ONE fused MXU matmul
        # ---- against the precomputed banded operator [Mmax; Mmean].
        comp = jnp.concatenate([cmax, cmean], axis=1).astype(mxu_dtype)  # (B, 2HW)
        conv = jnp.dot(comp, mop_ref[...],
                       preferred_element_type=f32) + cb_ref[0]           # (B, HW)
        scale = jax.nn.sigmoid(conv)

        # ---- out = x1 * scale, re-reading x1 from o_ref (cheap VMEM reads).
        for ci in range(n_chunks):
            c0 = ci * c_chunk
            x1c = o_ref[:, c0:c0 + c_chunk, :].astype(f32)
            o_ref[:, c0:c0 + c_chunk, :] = (
                x1c * scale[:, None, :]).astype(o_ref.dtype)

    return kernel


# --------------------------- wrapper helpers ---------------------------------
def _spatial_conv_operator(conv_w, H, W):
    """Express the 7x7 zero-padded (pad=3) Conv2d(2 -> 1) as ONE (2*HW, HW)
    matmul operator acting on [max_flat | mean_flat]:
        conv_out_flat = concat([max_flat, mean_flat], -1) @ M + bias
    conv_w: (1, 2, 7, 7) with channel 0 = max map, channel 1 = mean map."""
    HW = H * W
    p = jnp.arange(HW)
    pi, pj = p // W, p % W                                   # output row / col
    kh = jnp.arange(7)[:, None, None]
    kw = jnp.arange(7)[None, :, None]
    si = pi[None, None, :] + (kh - 3)                        # (7, 7, HW)
    sj = pj[None, None, :] + (kw - 3)
    valid = (si >= 0) & (si < H) & (sj >= 0) & (sj < W)
    q_tgt = jnp.where(valid, si * W + sj, -1).reshape(49, 1, HW)
    # S[k, q, p] == 1 iff input position q feeds output position p for tap k.
    S = (jnp.arange(HW)[None, :, None] == q_tgt).astype(jnp.float32)  # (49,HW,HW)
    mmax = jnp.tensordot(conv_w[0, 0].reshape(49), S, axes=1)         # (HW, HW)
    mmean = jnp.tensordot(conv_w[0, 1].reshape(49), S, axes=1)        # (HW, HW)
    return jnp.concatenate([mmax, mmean], axis=0)                     # (2HW, HW)


def _vmem_capacity_bytes():
    try:
        return int(pltpu.get_tpu_info().vmem_capacity_bytes)
    except Exception:                       # conservative fallback (v7x per-TC)
        return 64 * 1024 * 1024


def _pick_batch_tile(N, per_image_bytes, x_budget_bytes,
                     target_tile_bytes=1 << 20, min_steps=4):
    """Smallest batch tile whose (in + out) bytes reach ~target_tile_bytes,
    subject to the double-buffered in+out fitting x_budget_bytes and keeping at
    least min(min_steps, N) grid steps for pipelining / megacore sharding."""
    divisors = [d for d in range(1, N + 1) if N % d == 0]
    need_steps = min(min_steps, N)
    allowed = [d for d in divisors
               if N // d >= need_steps and 4 * d * per_image_bytes <= x_budget_bytes]
    if not allowed:
        allowed = [1]
    for d in allowed:                       # ascending: smallest big-enough tile
        if 2 * d * per_image_bytes >= target_tile_bytes:
            return d
    return max(allowed)


def _pick_c_chunk(b_tile, C, HW, vreg_budget_bytes=128 * 1024):
    """Largest channel chunk (divisor of C, sublane-aligned when possible)
    whose f32 working slab stays within a modest register budget."""
    divs = [d for d in range(1, C + 1)
            if C % d == 0 and (d % 8 == 0 or d == C)]
    fitting = [d for d in divs if b_tile * d * HW * 4 <= vreg_budget_bytes]
    return max(fitting) if fitting else min(divs)


# ------------------------------ wrapper --------------------------------------
@partial(jax.jit, static_argnames=("mxu_dtype",))
def cbam_pallas(x, w1, b1, w2, b2, conv_w, conv_b, mxu_dtype=jnp.bfloat16):
    N, C, H, W = x.shape
    HW = H * W
    HID = w1.shape[1]
    HIDP = max(128, ((HID + 127) // 128) * 128)     # lane-dense hidden dim

    f32 = jnp.float32
    # MXU-facing operands in bf16 (f32 accumulate via preferred_element_type);
    # biases and all elementwise math stay f32.
    w1p = jnp.zeros((C, HIDP), f32).at[:, :HID].set(w1.astype(f32)).astype(mxu_dtype)
    b1p = jnp.zeros((1, HIDP), f32).at[0, :HID].set(b1.astype(f32))
    w2p = jnp.zeros((HIDP, C), f32).at[:HID, :].set(w2.astype(f32)).astype(mxu_dtype)
    b2p = b2.reshape(1, C).astype(f32)

    mop = _spatial_conv_operator(conv_w.astype(f32), H, W).astype(mxu_dtype)
    cb = conv_b.reshape(1).astype(f32)

    x_flat = x.reshape(N, C, HW)            # free metadata reshape (NCHW)

    # --------- tiling / VMEM budgeting (per-generation, includes operands) ---
    itemsize = x.dtype.itemsize
    per_image = C * HW * itemsize
    vmem_cap = _vmem_capacity_bytes()
    inv_bytes = 2 * (w1p.size * 2 + w2p.size * 2 + mop.size * 2      # bf16, 2x buf
                     + (b1p.size + b2p.size) * 4)
    x_budget = max(1 << 20, vmem_cap // 2 - inv_bytes)
    B_TILE = _pick_batch_tile(N, per_image, x_budget)
    C_CHUNK = _pick_c_chunk(B_TILE, C, HW)

    need = 4 * B_TILE * per_image + inv_bytes                         # real footprint
    vmem_limit = int(min(max(32 << 20, 2 * need), vmem_cap))

    grid = (N // B_TILE,)
    kernel = _make_cbam_kernel(C_CHUNK, inv_hw=1.0 / HW, inv_c=1.0 / C,
                               mxu_dtype=mxu_dtype)

    grid_spec = pltpu.PrefetchScalarGridSpec(
        num_scalar_prefetch=0,
        grid=grid,
        in_specs=[
            pl.BlockSpec((B_TILE, C, HW), lambda b: (b, 0, 0)),    # x
            pl.BlockSpec((C, HIDP), lambda b: (0, 0)),             # w1 (bf16)
            pl.BlockSpec((1, HIDP), lambda b: (0, 0)),             # b1
            pl.BlockSpec((HIDP, C), lambda b: (0, 0)),             # w2 (bf16)
            pl.BlockSpec((1, C), lambda b: (0, 0)),                # b2
            pl.BlockSpec((2 * HW, HW), lambda b: (0, 0)),          # fused conv op
            pl.BlockSpec(memory_space=pltpu.MemorySpace.SMEM),     # conv bias
        ],
        out_specs=pl.BlockSpec((B_TILE, C, HW), lambda b: (b, 0, 0)),
    )

    out_flat = pl.pallas_call(
        kernel,
        out_shape=jax.ShapeDtypeStruct((N, C, HW), x.dtype),
        grid_spec=grid_spec,
        compiler_params=pltpu.CompilerParams(
            dimension_semantics=("parallel",),
            vmem_limit_bytes=vmem_limit),
    )(x_flat, w1p, b1p, w2p, b2p, mop, cb)

    return out_flat.reshape(N, C, H, W)


# --------------------------- pure-JAX reference ------------------------------
def cbam_reference(x, w1, b1, w2, b2, conv_w, conv_b):
    avg = x.mean(axis=(2, 3))
    mx = x.max(axis=(2, 3))

    def mlp(v):
        return jnp.maximum(v @ w1 + b1, 0.0) @ w2 + b2

    att = jax.nn.sigmoid(mlp(avg) + mlp(mx))[:, :, None, None]
    x1 = x * att

    comp = jnp.stack([x1.max(axis=1), x1.mean(axis=1)], axis=1)      # (N,2,H,W)
    conv = lax.conv_general_dilated(
        comp, conv_w.reshape(1, 2, 7, 7), window_strides=(1, 1),
        padding=[(3, 3), (3, 3)],
        dimension_numbers=("NCHW", "OIHW", "NCHW")) + conv_b[0]
    return x1 * jax.nn.sigmoid(conv)


# --------------------------------- main ---------------------------------------
if __name__ == "__main__":
    N, C, H, W = 2, 32, 16, 16
    reduction_ratio = 16
    HID = C // reduction_ratio

    key = jax.random.PRNGKey(0)
    kx, k1, k2, k3, k4, k5, k6 = jax.random.split(key, 7)

    x = jax.random.normal(kx, (N, C, H, W), jnp.float32)

    # ChannelGate MLP: Linear(C -> C//r), ReLU, Linear(C//r -> C)
    # (stored as (in, out) matrices; equivalent to PyTorch's (out, in).T)
    w1 = jax.random.normal(k1, (C, HID), jnp.float32) * 0.2
    b1 = jax.random.normal(k2, (HID,), jnp.float32) * 0.1
    w2 = jax.random.normal(k3, (HID, C), jnp.float32) * 0.2
    b2 = jax.random.normal(k4, (C,), jnp.float32) * 0.1

    # SpatialGate: Conv2d(2 -> 1, kernel_size=7, padding=3), weight (1,2,7,7)
    conv_w = jax.random.normal(k5, (1, 2, 7, 7), jnp.float32) * 0.1
    conv_b = jax.random.normal(k6, (1,), jnp.float32) * 0.1

    out = jax.block_until_ready(cbam_pallas(x, w1, b1, w2, b2, conv_w, conv_b))

    ref = cbam_reference(x, w1, b1, w2, b2, conv_w, conv_b)
    # Tolerance is loosened because the kernel feeds the MXU bf16 operands
    # (channel-MLP weights + spatial-conv operator); elementwise math is f32.
    np.testing.assert_allclose(np.asarray(out), np.asarray(ref),
                               rtol=5e-2, atol=5e-2)

    print("KERNEL_OK")
</pallas_src>

<mosaic_0001>
module attributes {stable_mosaic.version = 11 : i64} {
  func.func @kernel(%arg0: i32, %arg1: memref<1x32x256xf32, #tpu.memory_space<vmem>>, %arg2: memref<32x128xbf16, #tpu.memory_space<vmem>>, %arg3: memref<1x128xf32, #tpu.memory_space<vmem>>, %arg4: memref<128x32xbf16, #tpu.memory_space<vmem>>, %arg5: memref<1x32xf32, #tpu.memory_space<vmem>>, %arg6: memref<512x256xbf16, #tpu.memory_space<vmem>>, %arg7: memref<1xf32, #tpu.memory_space<smem>>, %arg8: memref<1x32x256xf32, #tpu.memory_space<vmem>>) attributes {dimension_semantics = [#tpu.dimension_semantics<parallel>], iteration_bounds = array<i64: 2>, scalar_prefetch = 0 : i64, scratch_operands = 0 : i64, tpu.core_type = #tpu.core_type<tc>, window_params = [{transform_indices = @transform_0, window_bounds = array<i64: 1, 32, 256>}, {pipeline_mode = #tpu.pipeline_mode<synchronous>, transform_indices = @transform_1, window_bounds = array<i64: 32, 128>}, {pipeline_mode = #tpu.pipeline_mode<synchronous>, transform_indices = @transform_2, window_bounds = array<i64: 1, 128>}, {pipeline_mode = #tpu.pipeline_mode<synchronous>, transform_indices = @transform_3, window_bounds = array<i64: 128, 32>}, {pipeline_mode = #tpu.pipeline_mode<synchronous>, transform_indices = @transform_4, window_bounds = array<i64: 1, 32>}, {pipeline_mode = #tpu.pipeline_mode<synchronous>, transform_indices = @transform_5, window_bounds = array<i64: 512, 256>}, {transform_indices = @transform_6, window_bounds = array<i64: 1>}, {transform_indices = @transform_7, window_bounds = array<i64: 1, 32, 256>}]} {
    %c0 = arith.constant 0 : index
    %c0_0 = arith.constant 0 : index
    %c0_1 = arith.constant 0 : index
    %0 = vector.load %arg1[%c0, %c0_0, %c0_1] : memref<1x32x256xf32, #tpu.memory_space<vmem>>, vector<1x32x256xf32>
    %cst = arith.constant dense<0.000000e+00> : vector<1x32xf32>
    %1 = vector.multi_reduction <add>, %0, %cst [2] : vector<1x32x256xf32> to vector<1x32xf32>
    %cst_2 = arith.constant 3.906250e-03 : f32
    %2 = vector.broadcast %cst_2 : f32 to vector<1x32xf32>
    %3 = arith.mulf %1, %2 : vector<1x32xf32>
    %cst_3 = arith.constant dense<0xFF800000> : vector<1x32xf32>
    %4 = vector.multi_reduction <maximumf>, %0, %cst_3 [2] : vector<1x32x256xf32> to vector<1x32xf32>
    %5 = tpu.concatenate %3, %4 in 0 : vector<1x32xf32>, vector<1x32xf32> -> vector<2x32xf32>
    %6 = arith.truncf %5 : vector<2x32xf32> to vector<2x32xbf16>
    %c0_4 = arith.constant 0 : index
    %c0_5 = arith.constant 0 : index
    %7 = vector.load %arg2[%c0_4, %c0_5] : memref<32x128xbf16, #tpu.memory_space<vmem>>, vector<32x128xbf16>
    %cst_6 = arith.constant dense<0.000000e+00> : vector<2x128xf32>
    %8 = tpu.matmul %6, %7, %cst_6 {dimension_numbers = #tpu.dot_dimension_numbers<[1], [0], [0], [1], [0, 0, 1, 1], [], []>} : vector<2x32xbf16>, vector<32x128xbf16>, vector<2x128xf32> -> vector<2x128xf32>
    %c0_7 = arith.constant 0 : index
    %c0_8 = arith.constant 0 : index
    %9 = vector.load %arg3[%c0_7, %c0_8] : memref<1x128xf32, #tpu.memory_space<vmem>>, vector<1x128xf32>
    %10 = vector.broadcast %9 : vector<1x128xf32> to vector<2x128xf32>
    %11 = arith.addf %8, %10 : vector<2x128xf32>
    %cst_9 = arith.constant 0.000000e+00 : f32
    %12 = vector.broadcast %cst_9 : f32 to vector<2x128xf32>
    %13 = arith.maximumf %11, %12 : vector<2x128xf32>
    %14 = arith.truncf %13 : vector<2x128xf32> to vector<2x128xbf16>
    %c0_10 = arith.constant 0 : index
    %c0_11 = arith.constant 0 : index
    %15 = vector.load %arg4[%c0_10, %c0_11] : memref<128x32xbf16, #tpu.memory_space<vmem>>, vector<128x32xbf16>
    %cst_12 = arith.constant dense<0.000000e+00> : vector<2x32xf32>
    %16 = tpu.matmul %14, %15, %cst_12 {dimension_numbers = #tpu.dot_dimension_numbers<[1], [0], [0], [1], [0, 0, 1, 1], [], []>} : vector<2x128xbf16>, vector<128x32xbf16>, vector<2x32xf32> -> vector<2x32xf32>
    %c0_13 = arith.constant 0 : index
    %c0_14 = arith.constant 0 : index
    %17 = vector.load %arg5[%c0_13, %c0_14] : memref<1x32xf32, #tpu.memory_space<vmem>>, vector<1x32xf32>
    %18 = vector.broadcast %17 : vector<1x32xf32> to vector<2x32xf32>
    %19 = arith.addf %16, %18 : vector<2x32xf32>
    %20 = vector.extract_strided_slice %19 {offsets = [0, 0], sizes = [1, 32], strides = [1, 1]} : vector<2x32xf32> to vector<1x32xf32>
    %21 = vector.extract_strided_slice %19 {offsets = [1, 0], sizes = [1, 32], strides = [1, 1]} : vector<2x32xf32> to vector<1x32xf32>
    %22 = arith.addf %20, %21 : vector<1x32xf32>
    %23 = arith.negf %22 : vector<1x32xf32>
    %24 = math.exp %23 : vector<1x32xf32>
    %cst_15 = arith.constant 1.000000e+00 : f32
    %25 = vector.broadcast %cst_15 : f32 to vector<1x32xf32>
    %26 = arith.addf %25, %24 : vector<1x32xf32>
    %27 = arith.divf %25, %26 : vector<1x32xf32>
    %cst_16 = arith.constant 0xFF800000 : f32
    %28 = vector.broadcast %cst_16 : f32 to vector<1x256xf32>
    %cst_17 = arith.constant 0.000000e+00 : f32
    %29 = vector.broadcast %cst_17 : f32 to vector<1x256xf32>
    %c0_18 = arith.constant 0 : index
    %c0_19 = arith.constant 0 : index
    %c0_20 = arith.constant 0 : index
    %30 = vector.load %arg1[%c0_18, %c0_19, %c0_20] : memref<1x32x256xf32, #tpu.memory_space<vmem>>, vector<1x32x256xf32>
    %31 = vector.shape_cast %27 : vector<1x32xf32> to vector<1x32x1xf32>
    %32 = vector.broadcast %31 : vector<1x32x1xf32> to vector<1x32x256xf32>
    %33 = arith.mulf %30, %32 : vector<1x32x256xf32>
    %c0_21 = arith.constant 0 : index
    %c0_22 = arith.constant 0 : index
    %c0_23 = arith.constant 0 : index
    %34 = vector.load %arg8[%c0_21, %c0_22, %c0_23] : memref<1x32x256xf32, #tpu.memory_space<vmem>>, vector<1x32x256xf32>
    tpu.vector_store %arg8[%c0_21, %c0_22, %c0_23], %33 {strides = array<i32>} : memref<1x32x256xf32, #tpu.memory_space<vmem>>, vector<1x32x256xf32>,
    %cst_24 = arith.constant dense<0xFF800000> : vector<1x256xf32>
    %35 = vector.multi_reduction <maximumf>, %33, %cst_24 [1] : vector<1x32x256xf32> to vector<1x256xf32>
    %36 = arith.maximumf %28, %35 : vector<1x256xf32>
    %cst_25 = arith.constant dense<0.000000e+00> : vector<1x256xf32>
    %37 = vector.multi_reduction <add>, %33, %cst_25 [1] : vector<1x32x256xf32> to vector<1x256xf32>
    %38 = arith.addf %29, %37 : vector<1x256xf32>
    %cst_26 = arith.constant 3.125000e-02 : f32
    %39 = vector.broadcast %cst_26 : f32 to vector<1x256xf32>
    %40 = arith.mulf %38, %39 : vector<1x256xf32>
    %41 = tpu.concatenate %36, %40 in 1 : vector<1x256xf32>, vector<1x256xf32> -> vector<1x512xf32>
    %42 = arith.truncf %41 : vector<1x512xf32> to vector<1x512xbf16>
    %c0_27 = arith.constant 0 : index
    %c0_28 = arith.constant 0 : index
    %43 = vector.load %arg6[%c0_27, %c0_28] : memref<512x256xbf16, #tpu.memory_space<vmem>>, vector<512x256xbf16>
    %cst_29 = arith.constant dense<0.000000e+00> : vector<1x256xf32>
    %44 = tpu.matmul %42, %43, %cst_29 {dimension_numbers = #tpu.dot_dimension_numbers<[1], [0], [0], [1], [0, 0, 1, 1], [], []>} : vector<1x512xbf16>, vector<512x256xbf16>, vector<1x256xf32> -> vector<1x256xf32>
    %c0_30 = arith.constant 0 : index
    %45 = memref.load %arg7[%c0_30] : memref<1xf32, #tpu.memory_space<smem>>
    %46 = vector.broadcast %45 : f32 to vector<1x256xf32>
    %47 = arith.addf %44, %46 : vector<1x256xf32>
    %48 = arith.negf %47 : vector<1x256xf32>
    %49 = math.exp %48 : vector<1x256xf32>
    %cst_31 = arith.constant 1.000000e+00 : f32
    %50 = vector.broadcast %cst_31 : f32 to vector<1x256xf32>
    %51 = arith.addf %50, %49 : vector<1x256xf32>
    %52 = arith.divf %50, %51 : vector<1x256xf32>
    %c0_32 = arith.constant 0 : index
    %c0_33 = arith.constant 0 : index
    %c0_34 = arith.constant 0 : index
    %53 = vector.load %arg8[%c0_32, %c0_33, %c0_34] : memref<1x32x256xf32, #tpu.memory_space<vmem>>, vector<1x32x256xf32>
    %54 = vector.shape_cast %52 : vector<1x256xf32> to vector<1x1x256xf32>
    %55 = vector.broadcast %54 : vector<1x1x256xf32> to vector<1x32x256xf32>
    %56 = arith.mulf %53, %55 : vector<1x32x256xf32>
    %c0_35 = arith.constant 0 : index
    %c0_36 = arith.constant 0 : index
    %c0_37 = arith.constant 0 : index
    %57 = vector.load %arg8[%c0_35, %c0_36, %c0_37] : memref<1x32x256xf32, #tpu.memory_space<vmem>>, vector<1x32x256xf32>
    tpu.vector_store %arg8[%c0_35, %c0_36, %c0_37], %56 {strides = array<i32>} : memref<1x32x256xf32, #tpu.memory_space<vmem>>, vector<1x32x256xf32>,
    return
  }
  func.func @transform_0(%arg0: i32) -> (i32, i32, i32) {
    %c0_i32 = arith.constant 0 : i32
    %c0_i32_0 = arith.constant 0 : i32
    %c0_i32_1 = arith.constant 0 : i32
    return %arg0, %c0_i32, %c0_i32_0 : i32, i32, i32
  }
  func.func @transform_1(%arg0: i32) -> (i32, i32) {
    %c0_i32 = arith.constant 0 : i32
    %c0_i32_0 = arith.constant 0 : i32
    %c0_i32_1 = arith.constant 0 : i32
    return %c0_i32, %c0_i32_0 : i32, i32
  }
  func.func @transform_2(%arg0: i32) -> (i32, i32) {
    %c0_i32 = arith.constant 0 : i32
    %c0_i32_0 = arith.constant 0 : i32
    %c0_i32_1 = arith.constant 0 : i32
    return %c0_i32, %c0_i32_0 : i32, i32
  }
  func.func @transform_3(%arg0: i32) -> (i32, i32) {
    %c0_i32 = arith.constant 0 : i32
    %c0_i32_0 = arith.constant 0 : i32
    %c0_i32_1 = arith.constant 0 : i32
    return %c0_i32, %c0_i32_0 : i32, i32
  }
  func.func @transform_4(%arg0: i32) -> (i32, i32) {
    %c0_i32 = arith.constant 0 : i32
    %c0_i32_0 = arith.constant 0 : i32
    %c0_i32_1 = arith.constant 0 : i32
    return %c0_i32, %c0_i32_0 : i32, i32
  }
  func.func @transform_5(%arg0: i32) -> (i32, i32) {
    %c0_i32 = arith.constant 0 : i32
    %c0_i32_0 = arith.constant 0 : i32
    %c0_i32_1 = arith.constant 0 : i32
    return %c0_i32, %c0_i32_0 : i32, i32
  }
  func.func @transform_6(%arg0: i32) -> i32 {
    %c0_i32 = arith.constant 0 : i32
    %c0_i32_0 = arith.constant 0 : i32
    return %c0_i32 : i32
  }
  func.func @transform_7(%arg0: i32) -> (i32, i32, i32) {
    %c0_i32 = arith.constant 0 : i32
    %c0_i32_0 = arith.constant 0 : i32
    %c0_i32_1 = arith.constant 0 : i32
    return %arg0, %c0_i32, %c0_i32_0 : i32, i32, i32
  }
}

</mosaic_0001>

<bundles_post_ra>
// kernel: squeeze.2
= control target key start
LH: loop header
LB: loop body
LE: loop exit
PB: predicated region body
PF: predicated region fallthrough
CT: control target
= control target key end

     0   :  { %s59_s10 = smov 42   ;;  %s60_s11 = smov 28   ;;  %vm3_vm0 = vcmask 56320   ;;  %vm9_vm1 = vcmask 400720   ;;  %vm15_vm2 = vcmask 343320   ;;  %vm21_vm3 = vcmask 285920   ;;  %s99_s0 = inlined_call_operand.vmem [shape: f32[7,7], index: 0, kind: input, shape index: {}]   ;;  %s100_s1 = inlined_call_operand.vmem [shape: f32[49], index: 1, kind: output, shape index: {}]  }
   0x1   :  { %v47_v0 = vld [vmem:[%s99_s0 + $0x6] sm:$0x1]   ;;  %v49_v1 = vld [vmem:[%s99_s0 + $0x4] sm:$0x1]   ;;  %v51_v2 = vld [vmem:[%s99_s0 + $0x2] sm:$0x1]  }
   0x2   :  { %7 = vrot.lane.b32.xlu0 %v47_v0, %s59_s10  ;;  %19 = vrot.lane.b32.xlu1 %v49_v1, %s60_s11  ;;  %s61_s14 = smov 14   ;;  %v48_v3 = vld [vmem:[%s99_s0 + $0x5] sm:$0x1]   ;;  %v50_v4 = vld [vmem:[%s99_s0 + $0x3] sm:$0x1]   ;;  %s62_s21 = smov 35  }
   0x3   :  { %31 = vrot.lane.b32.xlu2 %v51_v2, %s61_s14  ;;  %v52_v5 = vld [vmem:[%s99_s0 + $0x1] sm:$0x1]   ;;  %s63_s22 = smov 21   ;;  %s64_s23 = smov 7   ;;  %v2_v6 = vld [vmem:[%s99_s0] sm:$0x1]  }
   0x4   :  { %4 = vst.msk [vmem:[#allocation0] sm:$0x1] %vm3_vm0, %v2_v6   ;;  %vm27_vm4 = vcmask 228520   ;;  %vm33_vm5 = vcmask 171120   ;;  %vm39_vm6 = vcmask 113720  }
   0xa   :  { %13 = vrot.lane.b32.xlu0 %v48_v3, %s62_s21  ;;  %25 = vrot.lane.b32.xlu1 %v50_v4, %s63_s22 }
   0xb   :  { %37 = vrot.lane.b32.xlu2 %v52_v5, %s64_s23 }
  0x5d   :  { %v32_v7 = vpop.permute.xlu2 %31  }
  0x65   :  { %v38_v8 = vpop.permute.xlu2 %37  }
  0x74   :  { %v8_v9 = vpop.permute.xlu0 %7   ;;  %v20_v10 = vpop.permute.xlu1 %19  }
  0x75   :  { %10 = vst.msk [vmem:[#allocation0] sm:$0x1] %vm9_vm1, %v8_v9  }
  0x7c   :  { %v14_v11 = vpop.permute.xlu0 %13   ;;  %v26_v12 = vpop.permute.xlu1 %25  }
  0x7d   :  { %16 = vst.msk [vmem:[#allocation0] sm:$0x1] %vm15_vm2, %v14_v11  }
  0x7e   :  { %22 = vst.msk [vmem:[#allocation0] sm:$0x1] %vm21_vm3, %v20_v10  }
  0x7f   :  { %28 = vst.msk [vmem:[#allocation0] sm:$0x1] %vm27_vm4, %v26_v12  }
  0x80   :  { %34 = vst.msk [vmem:[#allocation0] sm:$0x1] %vm33_vm5, %v32_v7  }
  0x81   :  { %40 = vst.msk [vmem:[#allocation0] sm:$0x1] %vm39_vm6, %v38_v8  }
  0x88   :  { %v43_v13 = vld [vmem:[#allocation0] sm:$0x1] }
  0x89   :  { %46 = vst [vmem:[%s100_s1] sm:$0x1] %v43_v13 }

// kernel: cbam_pallas.1
= control target key start
LH: loop header
LB: loop body
LE: loop exit
PB: predicated region body
PF: predicated region fallthrough
CT: control target
= control target key end

     0   :  { %s1654_s26 = smov 0   ;;  %s2188_s0 = inlined_call_operand.vmem [shape: f32[2,32,256], index: 0, kind: input, shape index: {}]   ;;  %s2189_s1 = inlined_call_operand.vmem [shape: bf16[32,128], index: 1, kind: input, shape index: {}]   ;;  %s2190_s2 = inlined_call_operand.vmem [shape: f32[1,128], index: 2, kind: input, shape index: {}]   ;;  %s2191_s3 = inlined_call_operand.vmem [shape: bf16[128,32], index: 3, kind: input, shape index: {}]   ;;  %s2192_s4 = inlined_call_operand.vmem [shape: f32[1,32], index: 4, kind: input, shape index: {}]   ;;  %s2193_s5 = inlined_call_operand.vmem [shape: bf16[512,256], index: 5, kind: input, shape index: {}]   ;;  %s2194_s6 = inlined_call_operand.<no memory space> [shape: f32[1], index: 6, kind: input, shape index: {}]   ;;  %s2195_s7 = inlined_call_operand.vmem [shape: f32[2,32,256], index: 7, kind: output, shape index: {}]  }
   0x1   :  { %12 = sst [smem:[#allocation2]] %s2194_s6 }
   0x2 LB: > { %s1189_s27 = sadd.s32 4294967295, %s1609_s26   ;;  %p1193_p0 = scmp.ge.s32.totalorder %s1609_s26, 1  ;;  %s1609_s26 = sphi %s1654_s26, %s18_s26  }
   0x3   : > { %p238_p1 = scmp.lt.s32.totalorder %s1609_s26, 3 }
   0x5   : > { %p239_p2 = pnand %p1193_p0, %p238_p1 }
   0x6   : > { %p270_p3 = scmp.lt.s32.totalorder (!%p239_p2), %s1189_s27, 1  ;;  %s644_s15 = sld [smem:[#allocation2]] (!%p239_p2) }
   0x7   : > { %242 = sbr.rel (%p239_p2) target bundleno = 778 (0x30a), region = 48 }
   0xc   : > { %s2197_s27 = smov (!%p270_p3, %s1189_s27), 1  ;;  %v1503_v16 = vld [vmem:[%s2189_s1 + $0x8] sm:$0xff]  ;;  %v1502_v17 = vld [vmem:[%s2189_s1] sm:$0xff]  ;;  %v1511_v18 = vld [vmem:[%s2191_s3 + $0x38] sm:$0xff]  ;;  %v321_v25 = vlaneseq  ;;  %vm326_vm0 = vcmask 130112   ;;  %vm330_vm1 = vcmask 195712  }
   0xd   : > { %s1500_s6 = sshll.u32 %s2197_s27, 6  ;;  %382 = vmatpush.bf16.msra.mxu0 %v1503_v16  ;;  %459 = vmatpush.bf16.msra.mxu1 %v1511_v18  ;;  %v1510_v19 = vld [vmem:[%s2191_s3 + $0x30] sm:$0xff]  ;;  %v1509_v20 = vld [vmem:[%s2191_s3 + $0x28] sm:$0xff]  ;;  %v1508_v24 = vld [vmem:[%s2191_s3 + $0x20] sm:$0xff]  ;;  %vm334_vm2 = vcmask 261312   ;;  %vm349_vm3 = vcmask 1040384  }
   0xe   : > { %s274_s30 = scalar_lea.vmem %s2188_s0, %s1500_s6  ;;  %v1507_v26 = vld [vmem:[%s2191_s3 + $0x18] sm:$0xff]  ;;  %v322_v27 = vand.u32 127, %v321_v25  ;;  %v1506_v33 = vld [vmem:[%s2191_s3 + $0x10] sm:$0xff]  ;;  %vm372_vm4 = vcmask 261120   ;;  %v1505_v57 = vld [vmem:[%s2191_s3 + $0x8] sm:$0xff]  ;;  %s2167_s18 = scalar_lea.vmem %s2195_s7, %s1500_s6 }
   0xf   : > { %v1670_v0 = vld [vmem:[%s274_s30] sm:$0xff]  ;;  %v1672_v1 = vld [vmem:[%s274_s30 + $0x8] sm:$0xff]  ;;  %v1684_v7 = vld [vmem:[%s274_s30 + $0x10] sm:$0xff] }
  0x10   : > { %v1674_v2 = vld [vmem:[%s274_s30 + $0x20] sm:$0xff]  ;;  %v305_v3 = vmax.f32 %v1670_v0, %v1672_v1  ;;  %v289_v4 = vadd.f32 %v1672_v1, %v1670_v0  ;;  %v1680_v5 = vld [vmem:[%s274_s30 + $0x28] sm:$0xff]  ;;  %v1686_v8 = vld [vmem:[%s274_s30 + $0x18] sm:$0xff]  ;;  %v324_v30 = vadd.s32 4294967288, %v322_v27  ;;  %v328_v34 = vadd.s32 4294967280, %v322_v27 }
  0x11   : > { %v295_v6 = vadd.f32 %v1680_v5, %v1674_v2  ;;  %v1688_v9 = vld [vmem:[%s274_s30 + $0x30] sm:$0xff]  ;;  %v1690_v10 = vld [vmem:[%s274_s30 + $0x38] sm:$0xff]  ;;  %v308_v11 = vmax.f32 %v1684_v7, %v1686_v8  ;;  %v292_v12 = vadd.f32 %v1686_v8, %v1684_v7  ;;  %v311_v14 = vmax.f32 %v1674_v2, %v1680_v5  ;;  %383 = vmatpush.bf16.msra.mxu0 %v1502_v17  ;;  %v1504_v58 = vld [vmem:[%s2191_s3] sm:$0xff] }
  0x12   : > { %306 = vmax.xlane.f32.xlu2 %v305_v3  ;;  %290 = vadd.xlane.f32.xlu0 %v289_v4  ;;  %v298_v13 = vadd.f32 %v1690_v10, %v1688_v9  ;;  %v314_v15 = vmax.f32 %v1688_v9, %v1690_v10  ;;  %v332_v39 = vadd.s32 4294967272, %v322_v27  ;;  %v1589_v59 = vld [vmem:[%s2190_s2] ss:$0 sm:$0xff]  ;;  %v497_v4 = vshrl.u32 %v321_v25, 7 }
  0x13   : > { %296 = vadd.xlane.f32.xlu1 %v295_v6  ;;  %460 = vmatpush.bf16.msra.mxu1 %v1510_v19 }
  0x14   : > { %1584 = vset.pattern.permute.xlu2 %v497_v4  ;;  %v510_v6 = vadd.s32 16, %v497_v4 }
  0x16   : > { %1586 = vset.pattern.permute.xlu1 %v510_v6  ;;  %v1537_v6 = vld [vmem:[%s2193_s5 + $0xc4] sm:$0xf0] }
  0x17   : > { %461 = vmatpush.bf16.msra.mxu1 %v1509_v20 }
  0x1a   : > { %309 = vmax.xlane.f32.xlu2 %v308_v11  ;;  %293 = vadd.xlane.f32.xlu0 %v292_v12  ;;  %v504_v11 = vadd.s32 8, %v497_v4  ;;  %v1590_v12 = vld [vmem:[%s2192_s4] ss:$0 sm:$0xff] }
  0x1b   : > { %299 = vadd.xlane.f32.xlu1 %v298_v13  ;;  %462 = vmatpush.bf16.msra.mxu1 %v1508_v24 }
  0x1c   : > { %1585 = vset.pattern.permute.xlu0 %v504_v11  ;;  %v1410_v11 = vld [vmem:[%s2193_s5 + $0x150] sm:$0xf] }
  0x1f   : > { %463 = vmatpush.bf16.msra.mxu1 %v1507_v26 }
  0x22   : > { %312 = vmax.xlane.f32.xlu0 %v311_v14 }
  0x23   : > { %315 = vmax.xlane.f32.xlu1 %v314_v15  ;;  %464 = vmatpush.bf16.msra.mxu1 %v1506_v33  ;;  %v1298_v33 = vld [vmem:[%s2193_s5 + $0x70] sm:$0xf] }
  0x27   : > { %465 = vmatpush.bf16.msra.mxu1 %v1505_v57  ;;  %v1557_v57 = vld [vmem:[%s2193_s5 + $0x164] sm:$0xf0] }
  0x2b   : > { %466 = vmatpush.bf16.msra.mxu1 %v1504_v58  ;;  %v1482_v58 = vld [vmem:[%s2193_s5 + $0x1e0] sm:$0xf] }
  0x85   : > { %v291_v21 = vpop.xlane.xlu0 %290  ;;  %v307_v22 = vpop.xlane.xlu2 %306 }
  0x86   : > { %v297_v23 = vpop.xlane.xlu1 %296  ;;  %v301_v28 = vmul.f32 0.00390625, %v291_v21  ;;  %v341_v41 = vperm.slane %v307_v22, %v322_v27 }
  0x87   : > { %v303_v35 = vmul.f32 0.00390625, %v297_v23 }
  0x88   : > { %v323_v38 = vperm.slane %v301_v28, %v322_v27 }
  0x89   : > { %v329_v44 = vperm.slane %v303_v35, %v328_v34  ;;  %v1362_v35 = vld [vmem:[%s2193_s5 + $0xf0] sm:$0xf] }
  0x8d   : > { %v294_v29 = vpop.xlane.xlu0 %293  ;;  %v310_v36 = vpop.xlane.xlu2 %309 }
  0x8e   : > { %v302_v31 = vmul.f32 0.00390625, %v294_v29  ;;  %v300_v32 = vpop.xlane.xlu1 %299  ;;  %v342_v42 = vperm.slane %v310_v36, %v324_v30 }
  0x8f   : > { %v304_v40 = vmul.f32 0.00390625, %v300_v32  ;;  %v516_v32 = vadd.s32 24, %v497_v4  ;;  %v1338_v4 = vld [vmem:[%s2193_s5 + $0xc0] sm:$0xf] }
  0x90   : > { %v325_v37 = vperm.slane %v302_v31, %v324_v30  ;;  %v343_v50 = vsel %vm326_vm0, %v342_v42, %v341_v41  ;;  %v1354_v41 = vld [vmem:[%s2193_s5 + $0xe0] sm:$0xf] }
  0x91   : > { %v333_v45 = vperm.slane %v304_v40, %v332_v39  ;;  %v1525_v40 = vld [vmem:[%s2193_s5 + $0x64] sm:$0xf0] }
  0x92   : > { %v327_v43 = vsel %vm326_vm0, %v325_v37, %v323_v38  ;;  %v1543_v37 = vld [vmem:[%s2193_s5 + $0xf4] sm:$0xf0] }
  0x93   : > { %v331_v49 = vsel %vm330_vm1, %v329_v44, %v327_v43  ;;  %v1363_v38 = vor.u32 %v1543_v37, %v1362_v35  ;;  %v1541_v43 = vld [vmem:[%s2193_s5 + $0xe4] sm:$0xf0]  ;;  %v1426_v44 = vld [vmem:[%s2193_s5 + $0x170] sm:$0xf]  ;;  %v1551_v37 = vld [vmem:[%s2193_s5 + $0x134] sm:$0xf0] }
  0x94   : > { %v335_v54 = vsel %vm334_vm2, %v333_v45, %v331_v49  ;;  %v1559_v45 = vld [vmem:[%s2193_s5 + $0x174] sm:$0xf0]  ;;  %v1533_v35 = vld [vmem:[%s2193_s5 + $0xa4] sm:$0xf0] }
  0x95   : > { %v313_v46 = vpop.xlane.xlu0 %312  ;;  %979 = vmatpush.bf16.msra.mxu3 %v1363_v38  ;;  %v1575_v49 = vld [vmem:[%s2193_s5 + $0x1f4] sm:$0xf0] }
  0x96   : > { %v344_v47 = vperm.slane %v313_v46, %v328_v34  ;;  %v316_v48 = vpop.xlane.xlu1 %315  ;;  %v1527_v34 = vld [vmem:[%s2193_s5 + $0x74] sm:$0xf0]  ;;  %v1355_v46 = vor.u32 %v1541_v43, %v1354_v41  ;;  %v1250_v43 = vld [vmem:[%s2193_s5 + $0x10] sm:$0xf] }
  0x97   : > { %v346_v51 = vperm.slane %v316_v48, %v332_v39  ;;  %v1299_v36 = vor.u32 %v1527_v34, %v1298_v33  ;;  %v1290_v39 = vld [vmem:[%s2193_s5 + $0x60] sm:$0xf]  ;;  %v1490_v48 = vld [vmem:[%s2193_s5 + $0x1f0] sm:$0xf]  ;;  %v1567_v41 = vld [vmem:[%s2193_s5 + $0x1b4] sm:$0xf0] }
  0x98   : > { %v345_v52 = vsel %vm330_vm1, %v344_v47, %v343_v50  ;;  %v1291_v42 = vor.u32 %v1525_v40, %v1290_v39  ;;  %v1427_v47 = vor.u32 %v1559_v45, %v1426_v44  ;;  %v1282_v50 = vld [vmem:[%s2193_s5 + $0x50] sm:$0xf]  ;;  %v1322_v33 = vld [vmem:[%s2193_s5 + $0xa0] sm:$0xf]  ;;  %v1515_v44 = vld [vmem:[%s2193_s5 + $0x14] sm:$0xf0] }
  0x99   : > { %v347_v53 = vsel %vm334_vm2, %v346_v51, %v345_v52  ;;  %966 = vmatpush.bf16.msra.mxu2 %v1299_v36  ;;  %v1491_v51 = vor.u32 %v1575_v49, %v1490_v48  ;;  %v1523_v52 = vld [vmem:[%s2193_s5 + $0x54] sm:$0xf0]  ;;  %980 = vmatpush.bf16.msra.mxu3 %v1355_v46  ;;  %v1394_v36 = vld [vmem:[%s2193_s5 + $0x130] sm:$0xf]  ;;  %v1323_v38 = vor.u32 %v1533_v35, %v1322_v33  ;;  %v1386_v48 = vld [vmem:[%s2193_s5 + $0x120] sm:$0xf] }
  0x9a   : > { %v350_v55 = vsel %vm349_vm3, %v335_v54, %v347_v53  ;;  %v1346_v53 = vld [vmem:[%s2193_s5 + $0xd0] sm:$0xf]  ;;  %v1539_v54 = vld [vmem:[%s2193_s5 + $0xd4] sm:$0xf0]  ;;  %992 = vmatpush.bf16.msrb.mxu0 %v1427_v47  ;;  %v1395_v39 = vor.u32 %v1551_v37, %v1394_v36  ;;  %v1251_v46 = vor.u32 %v1515_v44, %v1250_v43  ;;  %v1549_v49 = vld [vmem:[%s2193_s5 + $0x124] sm:$0xf0] }
  0x9b   : > { %v351_v56 = vpack.c.bf16 %v350_v55, %v350_v55  ;;  %v1283_v55 = vor.u32 %v1523_v52, %v1282_v50  ;;  %1005 = vmatpush.bf16.msrb.mxu1 %v1491_v51  ;;  %v1458_v40 = vld [vmem:[%s2193_s5 + $0x1b0] sm:$0xf]  ;;  %v1531_v47 = vld [vmem:[%s2193_s5 + $0x94] sm:$0xf0]  ;;  %v1387_v51 = vor.u32 %v1549_v49, %v1386_v48  ;;  %v1450_v52 = vld [vmem:[%s2193_s5 + $0x1a0] sm:$0xf] }
  0x9c   : > { %v1314_v45 = vld [vmem:[%s2193_s5 + $0x90] sm:$0xf]  ;;  %v1522_v35 = vld [vmem:[%s2193_s5 + $0x54] sm:$0xf]  ;;  %v1284_v36 = vld [vmem:[%s2193_s5 + $0x58] sm:$0xf0] }
  0x9d   : > { %1206 = vmatmul.msk.bf16.vlgmr.msra.gmra.mxu0 %vm372_vm4, %v351_v56  ;;  %967 = vmatpush.bf16.msra.mxu2 %v1291_v42  ;;  %v1418_v56 = vld [vmem:[%s2193_s5 + $0x160] sm:$0xf]  ;;  %v1459_v42 = vor.u32 %v1567_v41, %v1458_v40  ;;  %v1315_v50 = vor.u32 %v1531_v47, %v1314_v45  ;;  %v1538_v37 = vld [vmem:[%s2193_s5 + $0xd4] sm:$0xf]  ;;  %v1420_v40 = vld [vmem:[%s2193_s5 + $0x168] sm:$0xf0]  ;;  %v1287_v41 = vor.u32 %v1522_v35, %v1284_v36 }
  0x9e   : > { %v1572_v43 = vld [vmem:[%s2193_s5 + $0x1e4] sm:$0xf]  ;;  %v1484_v44 = vld [vmem:[%s2193_s5 + $0x1e8] sm:$0xf0] }
  0x9f   : > { %v1520_v45 = vld [vmem:[%s2193_s5 + $0x44] sm:$0xf]  ;;  %v1487_v47 = vor.u32 %v1572_v43, %v1484_v44  ;;  %v1276_v48 = vld [vmem:[%s2193_s5 + $0x48] sm:$0xf0]  ;;  %v1546_v44 = vld [vmem:[%s2193_s5 + $0x114] sm:$0xf] }
  0xa0   : > { %v1536_v49 = vld [vmem:[%s2193_s5 + $0xc4] sm:$0xf]  ;;  %v1308_v43 = vld [vmem:[%s2193_s5 + $0x88] sm:$0xf0] }
  0xa1   : > { %968 = vmatpush.bf16.msra.mxu2 %v1283_v55  ;;  %v1242_v55 = vld [vmem:[%s2193_s5] sm:$0xf] }
 0x11a   : > { %v385_v60 = vpop.f32.mrf.mxu0 }
 0x11b   : > { %v386_v61 = vadd.f32 %v1589_v59, %v385_v60  ;;  %v1347_v59 = vor.u32 %v1539_v54, %v1346_v53  ;;  %v1419_v60 = vor.u32 %v1557_v57, %v1418_v56  ;;  %v1565_v53 = vld [vmem:[%s2193_s5 + $0x1a4] sm:$0xf0]  ;;  %v1306_v57 = vld [vmem:[%s2193_s5 + $0x80] sm:$0xf] }
 0x11c   : > { %v1451_v54 = vor.u32 %v1565_v53, %v1450_v52  ;;  %v1513_v56 = vld [vmem:[%s2193_s5 + $0x4] sm:$0xf0]  ;;  %v1412_v52 = vld [vmem:[%s2193_s5 + $0x158] sm:$0xf0]  ;;  %v1570_v53 = vld [vmem:[%s2193_s5 + $0x1d4] sm:$0xf] }
 0x11d   : > { %v389_v62 = vmax.f32 %v386_v61, 0.0  ;;  %v1573_v61 = vld [vmem:[%s2193_s5 + $0x1e4] sm:$0xf0]  ;;  %993 = vmatpush.bf16.msrb.mxu0 %v1419_v60  ;;  %981 = vmatpush.bf16.msra.mxu3 %v1347_v59  ;;  %v1378_v60 = vld [vmem:[%s2193_s5 + $0x110] sm:$0xf] }
 0x11e   : > { %v1529_v59 = vld [vmem:[%s2193_s5 + $0x84] sm:$0xf0] }
 0x11f   : > { %v390_v63 = vpack.c.bf16 %v389_v62, %v389_v62  ;;  %v1274_v62 = vld [vmem:[%s2193_s5 + $0x40] sm:$0xf] }
 0x121   : > { %467 = vmatmul.bf16.vlgmr.msra.gmra.mxu1 %v390_v63  ;;  %v1521_v63 = vld [vmem:[%s2193_s5 + $0x44] sm:$0xf0] }
 0x122   : > { %v387_v3 = vpop.f32.mrf.mxu0 }
 0x123   : > { %v1483_v3 = vor.u32 %v1573_v61, %v1482_v58  ;;  %v1243_v58 = vor.u32 %v1513_v56, %v1242_v55  ;;  %v1547_v61 = vld [vmem:[%s2193_s5 + $0x114] sm:$0xf0]  ;;  %v1279_v55 = vor.u32 %v1520_v45, %v1276_v48  ;;  %v1562_v48 = vld [vmem:[%s2193_s5 + $0x194] sm:$0xf] }
 0x125   : > { %1006 = vmatpush.bf16.msrb.mxu1 %v1483_v3  ;;  %v1442_v3 = vld [vmem:[%s2193_s5 + $0x190] sm:$0xf] }
 0x19e   : > { %v468_v13 = vpop.f32.mrf.mxu1 }
 0x19f   : > { %v469_v14 = vadd.f32 %v1590_v12, %v468_v13  ;;  %v1555_v12 = vld [vmem:[%s2193_s5 + $0x154] sm:$0xf0]  ;;  %v1474_v13 = vld [vmem:[%s2193_s5 + $0x1d0] sm:$0xf] }
 0x1a1   : > { %v473_v15 = vrot.slane %v469_v14, 1 }
 0x1a3   : > { %v475_v16 = vadd.f32 %v473_v15, %v469_v14  ;;  %v1571_v14 = vld [vmem:[%s2193_s5 + $0x1d4] sm:$0xf0]  ;;  %v1275_v15 = vor.u32 %v1521_v63, %v1274_v62  ;;  %v1307_v62 = vor.u32 %v1529_v59, %v1306_v57  ;;  %v1379_v63 = vor.u32 %v1547_v61, %v1378_v60  ;;  %v1518_v59 = vld [vmem:[%s2193_s5 + $0x34] sm:$0xf]  ;;  %v1268_v60 = vld [vmem:[%s2193_s5 + $0x38] sm:$0xf0] }
 0x1a4   : > { %v1534_v61 = vld [vmem:[%s2193_s5 + $0xb4] sm:$0xf] }
 0x1a5   : > { %v1239_v17 = vmul.f32 -1.442695, %v475_v16  ;;  %v1411_v16 = vor.u32 %v1555_v12, %v1410_v11  ;;  %969 = vmatpush.bf16.msra.mxu2 %v1275_v15  ;;  %v1300_v12 = vld [vmem:[%s2193_s5 + $0x78] sm:$0xf0] }
 0x1a6   : > { %v470_v18 = vpop.f32.mrf.mxu1 }
 0x1a7   : > { %1591 = vpow2.f32 %v1239_v17  ;;  %v1339_v17 = vor.u32 %v1537_v6, %v1338_v4  ;;  %v1475_v18 = vor.u32 %v1571_v14, %v1474_v13  ;;  %994 = vmatpush.bf16.msrb.mxu0 %v1411_v16  ;;  %v1563_v4 = vld [vmem:[%s2193_s5 + $0x194] sm:$0xf0]  ;;  %v1526_v6 = vld [vmem:[%s2193_s5 + $0x74] sm:$0xf]  ;;  %v1364_v14 = vld [vmem:[%s2193_s5 + $0xf8] sm:$0xf0] }
 0x1a8   : > { %v1443_v11 = vor.u32 %v1563_v4, %v1442_v3  ;;  %v1542_v13 = vld [vmem:[%s2193_s5 + $0xf4] sm:$0xf]  ;;  %v1303_v15 = vor.u32 %v1526_v6, %v1300_v12  ;;  %v1332_v3 = vld [vmem:[%s2193_s5 + $0xb8] sm:$0xf0]  ;;  %v1552_v4 = vld [vmem:[%s2193_s5 + $0x144] sm:$0xf] }
 0x1a9   : > { %982 = vmatpush.bf16.msra.mxu3 %v1339_v17  ;;  %1007 = vmatpush.bf16.msrb.mxu1 %v1475_v18  ;;  %v1367_v16 = vor.u32 %v1542_v13, %v1364_v14  ;;  %v1370_v17 = vld [vmem:[%s2193_s5 + $0x100] sm:$0xf]  ;;  %v1545_v18 = vld [vmem:[%s2193_s5 + $0x104] sm:$0xf0]  ;;  %v1404_v6 = vld [vmem:[%s2193_s5 + $0x148] sm:$0xf0] }
 0x1aa   : > { %v1407_v12 = vor.u32 %v1552_v4, %v1404_v6  ;;  %v1568_v13 = vld [vmem:[%s2193_s5 + $0x1c4] sm:$0xf]  ;;  %v1468_v14 = vld [vmem:[%s2193_s5 + $0x1c8] sm:$0xf0] }
 0x1ab   : > { %v1436_v6 = vld [vmem:[%s2193_s5 + $0x188] sm:$0xf0] }
 0x1ad   : > { %v1592_v19 = vpop.eup %1591 }
 0x1ae   : > { %v479_v20 = vadd.f32 1.0, %v1592_v19  ;;  %v1266_v19 = vld [vmem:[%s2193_s5 + $0x30] sm:$0xf] }
 0x1b0   : > { %1593 = vrcp.f32 %v479_v20  ;;  %v491_v24 = vand.u32 2147483648, %v479_v20  ;;  %v489_v26 = vand.u32 2147483647, %v479_v20  ;;  %vm485_vm6 = vweird.f32 %v479_v20 }
 0x1b2   : > { %v492_v28 = vor.u32 1.1754944e-38, %v491_v24  ;;  %vm490_vm8 = vcmp.eq.f32.partialorder %v489_v26, 8.507059e+37  ;;  %v1402_v24 = vld [vmem:[%s2193_s5 + $0x140] sm:$0xf] }
 0x1b6   : > { %v1594_v21 = vpop.eup %1593 }
 0x1b7   : > { %v481_v22 = vmul.f32 %v1594_v21, %v479_v20  ;;  %vm486_vm5 = vweird.f32 %v1594_v21  ;;  %v1519_v20 = vld [vmem:[%s2193_s5 + $0x34] sm:$0xf0] }
 0x1b8   : > { %vm487_vm7 = vmor %vm485_vm6, %vm486_vm5 }
 0x1b9   : > { %v482_v23 = vsub.f32 1.0, %v481_v22  ;;  %v1267_v22 = vor.u32 %v1519_v20, %v1266_v19  ;;  %v1434_v19 = vld [vmem:[%s2193_s5 + $0x180] sm:$0xf]  ;;  %v1371_v20 = vor.u32 %v1545_v18, %v1370_v17  ;;  %v1260_v17 = vld [vmem:[%s2193_s5 + $0x28] sm:$0xf0] }
 0x1ba   : > { %v1532_v18 = vld [vmem:[%s2193_s5 + $0xa4] sm:$0xf] }
 0x1bb   : > { %v483_v25 = vmul.f32 %v1594_v21, %v482_v23  ;;  %v1535_v23 = vld [vmem:[%s2193_s5 + $0xb4] sm:$0xf0]  ;;  %970 = vmatpush.bf16.msra.mxu2 %v1267_v22  ;;  %v1524_v22 = vld [vmem:[%s2193_s5 + $0x64] sm:$0xf] }
 0x1bd   : > { %v484_v27 = vadd.f32 %v1594_v21, %v483_v25  ;;  %v1553_v25 = vld [vmem:[%s2193_s5 + $0x144] sm:$0xf0] }
 0x1bf   : > { %v488_v29 = vsel %vm487_vm7, %v1594_v21, %v484_v27  ;;  %v1330_v21 = vld [vmem:[%s2193_s5 + $0xb0] sm:$0xf]  ;;  %v1403_v27 = vor.u32 %v1553_v25, %v1402_v24 }
 0x1c0   : > { %v493_v30 = vsel %vm490_vm8, %v492_v28, %v488_v29  ;;  %v1331_v26 = vor.u32 %v1535_v23, %v1330_v21  ;;  %v1466_v28 = vld [vmem:[%s2193_s5 + $0x1c0] sm:$0xf]  ;;  %v1569_v29 = vld [vmem:[%s2193_s5 + $0x1c4] sm:$0xf0]  ;;  %v1292_v23 = vld [vmem:[%s2193_s5 + $0x68] sm:$0xf0] }
 0x1c1   : > { %v495_v31 = vperm.slane %v493_v30, 0  ;;  %v1467_v30 = vor.u32 %v1569_v29, %v1466_v28  ;;  %995 = vmatpush.bf16.msrb.mxu0 %v1403_v27  ;;  %v1561_v21 = vld [vmem:[%s2193_s5 + $0x184] sm:$0xf0]  ;;  %v1295_v25 = vor.u32 %v1524_v22, %v1292_v23  ;;  %v1356_v27 = vld [vmem:[%s2193_s5 + $0xe8] sm:$0xf0] }
 0x1c2   : > { %983 = vmatpush.bf16.msra.mxu3 %v1331_v26  ;;  %v1435_v24 = vor.u32 %v1561_v21, %v1434_v19  ;;  %v1540_v26 = vld [vmem:[%s2193_s5 + $0xe4] sm:$0xf]  ;;  %v1558_v28 = vld [vmem:[%s2193_s5 + $0x174] sm:$0xf]  ;;  %v1396_v22 = vld [vmem:[%s2193_s5 + $0x138] sm:$0xf0] }
 0x1c3   : > { %512 = vperm.xlu1 %1586, %v495_v31   ;;  %506 = vperm.xlu0 %1585, %v495_v31   ;;  %v1359_v29 = vor.u32 %v1540_v26, %v1356_v27  ;;  %v1550_v21 = vld [vmem:[%s2193_s5 + $0x134] sm:$0xf] }
 0x1c4   : > { %500 = vperm.xlu2 %1584, %v495_v31   ;;  %1008 = vmatpush.bf16.msrb.mxu1 %v1467_v30  ;;  %v1428_v30 = vld [vmem:[%s2193_s5 + $0x178] sm:$0xf0]  ;;  %v1514_v26 = vld [vmem:[%s2193_s5 + $0x14] sm:$0xf]  ;;  %v1399_v27 = vor.u32 %v1550_v21, %v1396_v22 }
 0x1c5   : > { %996 = vmatpush.bf16.msrb.mxu0 %v1395_v39  ;;  %v1431_v33 = vor.u32 %v1558_v28, %v1428_v30  ;;  %v1556_v39 = vld [vmem:[%s2193_s5 + $0x164] sm:$0xf]  ;;  %v1530_v30 = vld [vmem:[%s2193_s5 + $0x94] sm:$0xf] }
 0x1c6   : > { %984 = vmatpush.bf16.msra.mxu3 %v1323_v38  ;;  %v1348_v38 = vld [vmem:[%s2193_s5 + $0xd8] sm:$0xf0] }
 0x1c8   : > { %1009 = vmatpush.bf16.msrb.mxu1 %v1459_v42  ;;  %v1351_v42 = vor.u32 %v1538_v37, %v1348_v38  ;;  %v1452_v37 = vld [vmem:[%s2193_s5 + $0x1a8] sm:$0xf0]  ;;  %v1512_v38 = vld [vmem:[%s2193_s5 + $0x4] sm:$0xf] }
 0x1c9   : > { %997 = vmatpush.bf16.msrb.mxu0 %v1387_v51  ;;  %v1554_v51 = vld [vmem:[%s2193_s5 + $0x154] sm:$0xf] }
 0x1ca   : > { %985 = vmatpush.bf16.msra.mxu3 %v1315_v50  ;;  %v1340_v50 = vld [vmem:[%s2193_s5 + $0xc8] sm:$0xf0]  ;;  %v1415_v57 = vor.u32 %v1554_v51, %v1412_v52 }
 0x1cb   : > { %1588 = vset.pattern.permute.xlu0 %v516_v32  ;;  %v1343_v56 = vor.u32 %v1536_v49, %v1340_v50  ;;  %v1444_v49 = vld [vmem:[%s2193_s5 + $0x198] sm:$0xf0] }
 0x1cc   : > { %1587 = vset.pattern.permute.xlu2 %v516_v32  ;;  %v1517_v32 = vld [vmem:[%s2193_s5 + $0x24] sm:$0xf0]  ;;  %1010 = vmatpush.bf16.msrb.mxu1 %v1451_v54  ;;  %v1476_v54 = vld [vmem:[%s2193_s5 + $0x1d8] sm:$0xf0] }
 0x1cd   : > { %998 = vmatpush.bf16.msrb.mxu0 %v1379_v63  ;;  %v1271_v63 = vor.u32 %v1518_v59, %v1268_v60 }
 0x1ce   : > { %986 = vmatpush.bf16.msra.mxu3 %v1307_v62 }
 0x1d0   : > { %1011 = vmatpush.bf16.msrb.mxu1 %v1443_v11  ;;  %v1335_v11 = vor.u32 %v1534_v61, %v1332_v3  ;;  %v1544_v61 = vld [vmem:[%s2193_s5 + $0x104] sm:$0xf] }
 0x1d1   : > { %999 = vmatpush.bf16.msrb.mxu0 %v1371_v20  ;;  %v1324_v20 = vld [vmem:[%s2193_s5 + $0xa8] sm:$0xf0] }
 0x1d2   : > { %1031 = vmatpush.bf16.msrb.mxu3 %v1367_v16  ;;  %v1516_v16 = vld [vmem:[%s2193_s5 + $0x24] sm:$0xf]  ;;  %v1327_v23 = vor.u32 %v1532_v18, %v1324_v20 }
 0x1d3   : > { %v1263_v19 = vor.u32 %v1516_v16, %v1260_v17 }
 0x1d4   : > { %518 = vperm.xlu2 %1587, %v495_v31   ;;  %v1258_v31 = vld [vmem:[%s2193_s5 + $0x20] sm:$0xf]  ;;  %1012 = vmatpush.bf16.msrb.mxu1 %v1435_v24  ;;  %v1566_v24 = vld [vmem:[%s2193_s5 + $0x1b4] sm:$0xf] }
 0x1d5   : > { %v1259_v34 = vor.u32 %v1517_v32, %v1258_v31  ;;  %v1574_v31 = vld [vmem:[%s2193_s5 + $0x1f4] sm:$0xf]  ;;  %v1492_v32 = vld [vmem:[%s2193_s5 + $0x1f8] sm:$0xf0]  ;;  %1044 = vmatpush.bf16.msra.mxu0 %v1431_v33  ;;  %v1388_v33 = vld [vmem:[%s2193_s5 + $0x128] sm:$0xf0] }
 0x1d6   : > { %1032 = vmatpush.bf16.msrb.mxu3 %v1359_v29  ;;  %v1252_v29 = vld [vmem:[%s2193_s5 + $0x18] sm:$0xf0] }
 0x1d7   : > { %971 = vmatpush.bf16.msra.mxu2 %v1259_v34  ;;  %v1495_v34 = vor.u32 %v1574_v31, %v1492_v32  ;;  %v1316_v31 = vld [vmem:[%s2193_s5 + $0x98] sm:$0xf0]  ;;  %v1548_v32 = vld [vmem:[%s2193_s5 + $0x124] sm:$0xf]  ;;  %v1255_v36 = vor.u32 %v1514_v26, %v1252_v29 }
 0x1d9   : > { %1057 = vmatpush.bf16.msra.mxu1 %v1495_v34  ;;  %v1564_v34 = vld [vmem:[%s2193_s5 + $0x1a4] sm:$0xf] }
 0x1da   : > { %1033 = vmatpush.bf16.msrb.mxu3 %v1351_v42  ;;  %v1528_v42 = vld [vmem:[%s2193_s5 + $0x84] sm:$0xf] }
 0x1db   : > { %972 = vmatpush.bf16.msra.mxu2 %v1251_v46  ;;  %v1423_v46 = vor.u32 %v1556_v39, %v1420_v40  ;;  %v1244_v39 = vld [vmem:[%s2193_s5 + $0x8] sm:$0xf0]  ;;  %v1319_v40 = vor.u32 %v1530_v30, %v1316_v31 }
 0x1dd   : > { %1045 = vmatpush.bf16.msra.mxu0 %v1423_v46  ;;  %1058 = vmatpush.bf16.msra.mxu1 %v1487_v47  ;;  %v1455_v46 = vor.u32 %v1564_v34, %v1452_v37  ;;  %v1380_v47 = vld [vmem:[%s2193_s5 + $0x118] sm:$0xf0] }
 0x1de   : > { %1034 = vmatpush.bf16.msrb.mxu3 %v1343_v56 }
 0x1df   : > { %973 = vmatpush.bf16.msra.mxu2 %v1243_v58  ;;  %v1479_v58 = vor.u32 %v1570_v53, %v1476_v54  ;;  %v1247_v54 = vor.u32 %v1512_v38, %v1244_v39 }
 0x1e1   : > { %1046 = vmatpush.bf16.msra.mxu0 %v1415_v57  ;;  %1059 = vmatpush.bf16.msra.mxu1 %v1479_v58  ;;  %v1447_v58 = vor.u32 %v1562_v48, %v1444_v49  ;;  %v645_v48 = vstv %s644_s15 }
 0x1e2   : > { %1035 = vmatpush.bf16.msrb.mxu3 %v1335_v11 }
 0x1e3   : > { %1018 = vmatpush.bf16.msrb.mxu2 %v1303_v15  ;;  %v1471_v15 = vor.u32 %v1568_v13, %v1468_v14 }
 0x1e5   : > { %1047 = vmatpush.bf16.msra.mxu0 %v1407_v12  ;;  %1060 = vmatpush.bf16.msra.mxu1 %v1471_v15 }
 0x1e6   : > { %1036 = vmatpush.bf16.msrb.mxu3 %v1327_v23 }
 0x1e7   : > { %1019 = vmatpush.bf16.msrb.mxu2 %v1295_v25  ;;  %v1460_v25 = vld [vmem:[%s2193_s5 + $0x1b8] sm:$0xf0] }
 0x1e8   : > { %v1463_v28 = vor.u32 %v1566_v24, %v1460_v25 }
 0x1e9   : > { %1048 = vmatpush.bf16.msra.mxu0 %v1399_v27 }
 0x1ea   : > { %1061 = vmatpush.bf16.msra.mxu1 %v1463_v28  ;;  %1037 = vmatpush.bf16.msrb.mxu3 %v1319_v40 }
 0x1eb   : > { %1020 = vmatpush.bf16.msrb.mxu2 %v1287_v41  ;;  %v1391_v41 = vor.u32 %v1548_v32, %v1388_v33 }
 0x1ed   : > { %1049 = vmatpush.bf16.msra.mxu0 %v1391_v41 }
 0x1ee   : > { %1062 = vmatpush.bf16.msra.mxu1 %v1455_v46 }
 0x1ef   : > { %1021 = vmatpush.bf16.msrb.mxu2 %v1279_v55 }
 0x1f2   : > { %1063 = vmatpush.bf16.msra.mxu1 %v1447_v58 }
 0x1f3   : > { %1022 = vmatpush.bf16.msrb.mxu2 %v1271_v63  ;;  %v1560_v63 = vld [vmem:[%s2193_s5 + $0x184] sm:$0xf] }
 0x1f4   : > { %v1439_v16 = vor.u32 %v1560_v63, %v1436_v6 }
 0x1f6   : > { %1064 = vmatpush.bf16.msra.mxu1 %v1439_v16 }
 0x1f7   : > { %1023 = vmatpush.bf16.msrb.mxu2 %v1263_v19 }
 0x1fb   : > { %1024 = vmatpush.bf16.msrb.mxu2 %v1255_v36 }
 0x1ff   : > { %1025 = vmatpush.bf16.msrb.mxu2 %v1247_v54 }
 0x21e   : > { %v501_v62 = vpop.permute.xlu2 %500 }
 0x21f   : > { %v2102_v45 = vmul.f32 %v501_v62, %v1670_v0  ;;  %v2114_v50 = vmul.f32 %v501_v62, %v1672_v1  ;;  %v1372_v62 = vld [vmem:[%s2193_s5 + $0x108] sm:$0xf0] }
 0x220   : > { %v1375_v13 = vor.u32 %v1544_v61, %v1372_v62 }
 0x22e   : > { %v519_v35 = vpop.permute.xlu2 %518 }
 0x22f   : > { %v2117_v51 = vmul.f32 %v519_v35, %v1688_v9  ;;  %v2120_v0 = vmul.f32 %v519_v35, %v1690_v10  ;;  %v1311_v9 = vor.u32 %v1528_v42, %v1308_v43  ;;  %v1383_v10 = vor.u32 %v1546_v44, %v1380_v47 }
 0x231   : > { %1038 = vmatpush.bf16.msrb.mxu3 %v1311_v9  ;;  %1050 = vmatpush.bf16.msra.mxu0 %v1383_v10 }
 0x235   : > { %v513_v52 = vpop.permute.xlu1 %512  ;;  %v507_v53 = vpop.permute.xlu0 %506  ;;  %1051 = vmatpush.bf16.msra.mxu0 %v1375_v13 }
 0x236   : > { %v2123_v55 = vmul.f32 %v513_v52, %v1674_v2  ;;  %v2126_v56 = vmul.f32 %v513_v52, %v1680_v5  ;;  %v2129_v57 = vmul.f32 %v507_v53, %v1684_v7  ;;  %v2132_v1 = vmul.f32 %v507_v53, %v1686_v8 }
 0x238   : > { %v536_v59 = vmax.f32 %v2102_v45, %v2123_v55  ;;  %v545_v2 = vmax.f32 %v2114_v50, %v2126_v56  ;;  %v537_v5 = vmax.f32 %v2129_v57, %v2117_v51  ;;  %v546_v7 = vmax.f32 %v2132_v1, %v2120_v0 }
 0x239   : > { %v554_v8 = vadd.f32 %v2129_v57, %v2102_v45  ;;  %v563_v60 = vadd.f32 %v2132_v1, %v2114_v50 }
 0x23a   : > { %v538_v3 = vmax.f32 %v536_v59, %v537_v5  ;;  %v547_v4 = vmax.f32 %v545_v2, %v546_v7 }
 0x23b   : > { %v555_v11 = vadd.f32 %v554_v8, %v2123_v55  ;;  %v564_v12 = vadd.f32 %v563_v60, %v2126_v56 }
 0x23c   : > { %v539_v14 = vrot.slane %v538_v3, 4  ;;  %v548_v15 = vrot.slane %v547_v4, 4 }
 0x23d   : > { %v556_v17 = vadd.f32 %v555_v11, %v2117_v51  ;;  %v565_v18 = vadd.f32 %v564_v12, %v2120_v0 }
 0x23e   : > { %v540_v19 = vmax.f32 %v538_v3, %v539_v14  ;;  %v549_v20 = vmax.f32 %v547_v4, %v548_v15 }
 0x23f   : > { %v557_v21 = vrot.slane %v556_v17, 4  ;;  %v566_v22 = vrot.slane %v565_v18, 4 }
 0x240   : > { %v541_v23 = vrot.slane %v540_v19, 2  ;;  %v550_v24 = vrot.slane %v549_v20, 2 }
 0x241   : > { %v558_v25 = vadd.f32 %v557_v21, %v556_v17  ;;  %v567_v26 = vadd.f32 %v566_v22, %v565_v18 }
 0x242   : > { %v542_v27 = vmax.f32 %v540_v19, %v541_v23  ;;  %v551_v28 = vmax.f32 %v549_v20, %v550_v24 }
 0x243   : > { %v559_v29 = vrot.slane %v558_v25, 2  ;;  %v568_v30 = vrot.slane %v567_v26, 2 }
 0x244   : > { %v543_v31 = vrot.slane %v542_v27, 1  ;;  %v552_v32 = vrot.slane %v551_v28, 1 }
 0x245   : > { %v560_v33 = vadd.f32 %v559_v29, %v558_v25  ;;  %v569_v34 = vadd.f32 %v568_v30, %v567_v26 }
 0x246   : > { %v544_v35 = vmax.f32 %v542_v27, %v543_v31  ;;  %v553_v36 = vmax.f32 %v551_v28, %v552_v32 }
 0x247   : > { %v561_v37 = vrot.slane %v560_v33, 1  ;;  %v570_v38 = vrot.slane %v569_v34, 1 }
 0x248   : > { %v576_v39 = vpack.c.bf16 %v544_v35, %v544_v35  ;;  %v577_v40 = vpack.c.bf16 %v553_v36, %v553_v36 }
 0x249   : > { %v562_v41 = vadd.f32 %v561_v37, %v560_v33  ;;  %v571_v42 = vadd.f32 %v570_v38, %v569_v34 }
 0x24a   : > { %974 = vmatmul.bf16.vlgmr.msra.gmra.mxu2 %v576_v39  ;;  %987 = vmatmul.bf16.vlgmr.msra.gmra.mxu3 %v577_v40 }
 0x24b   : > { %v574_v43 = vmul.f32 0.03125, %v562_v41  ;;  %v575_v44 = vmul.f32 0.03125, %v571_v42 }
 0x24d   : > { %v578_v46 = vpack.c.bf16 %v574_v43, %v574_v43  ;;  %v579_v47 = vpack.c.bf16 %v575_v44, %v575_v44 }
 0x24f   : > { %1000 = vmatmul.bf16.vlgmr.msrb.gmra.mxu0 %v578_v46  ;;  %1013 = vmatmul.bf16.vlgmr.msrb.gmra.mxu1 %v579_v47 }
 0x25a   : > { %1026 = vmatmul.bf16.vlgmr.msrb.gmra.mxu2 %v576_v39  ;;  %1039 = vmatmul.bf16.vlgmr.msrb.gmra.mxu3 %v577_v40 }
 0x25f   : > { %1052 = vmatmul.bf16.vlgmr.msra.gmra.mxu0 %v578_v46  ;;  %1065 = vmatmul.bf16.vlgmr.msra.gmra.mxu1 %v579_v47 }
 0x2cc   : > { %v1001_v49 = vpop.f32.mrf.mxu0  ;;  %v1014_v52 = vpop.f32.mrf.mxu1 }
 0x2cd   : > { %v975_v53 = vpop.f32.mrf.mxu2  ;;  %v988_v54 = vpop.f32.mrf.mxu3 }
 0x2ce   : > { %v976_v9 = vadd.f32 %v975_v53, %v645_v48 }
 0x2d0   : > { %v989_v10 = vadd.f32 %v988_v54, %v976_v9 }
 0x2d2   : > { %v1002_v58 = vadd.f32 %v1001_v49, %v989_v10 }
 0x2d4   : > { %v1015_v59 = vadd.f32 %v1014_v52, %v1002_v58  ;;  %v1003_v2 = vpop.f32.mrf.mxu0  ;;  %v1016_v5 = vpop.f32.mrf.mxu1 }
 0x2d5   : > { %v977_v7 = vpop.f32.mrf.mxu2  ;;  %v990_v8 = vpop.f32.mrf.mxu3 }
 0x2d6   : > { %v1496_v60 = vmul.f32 -1.442695, %v1015_v59 }
 0x2d8   : > { %1595 = vpow2.f32 %v1496_v60 }
 0x2dc   : > { %v1053_v61 = vpop.f32.mrf.mxu0  ;;  %v1066_v62 = vpop.f32.mrf.mxu1 }
 0x2dd   : > { %v1027_v63 = vpop.f32.mrf.mxu2  ;;  %v1040_v3 = vpop.f32.mrf.mxu3 }
 0x2de   : > { %v1596_v4 = vpop.eup %1595  ;;  %v1028_v6 = vadd.f32 %v1027_v63, %v645_v48 }
 0x2df   : > { %v1076_v11 = vadd.f32 1.0, %v1596_v4 }
 0x2e0   : > { %v1041_v12 = vadd.f32 %v1040_v3, %v1028_v6 }
 0x2e1   : > { %1597 = vrcp.f32 %v1076_v11  ;;  %v1089_v23 = vand.u32 2147483648, %v1076_v11  ;;  %v1087_v25 = vand.u32 2147483647, %v1076_v11  ;;  %vm1083_vm10 = vweird.f32 %v1076_v11 }
 0x2e2   : > { %v1054_v13 = vadd.f32 %v1053_v61, %v1041_v12 }
 0x2e3   : > { %v1090_v28 = vor.u32 1.1754944e-38, %v1089_v23  ;;  %vm1088_vm12 = vcmp.eq.f32.partialorder %v1087_v25, 8.507059e+37 }
 0x2e4   : > { %v1067_v14 = vadd.f32 %v1066_v62, %v1054_v13  ;;  %v1055_v15 = vpop.f32.mrf.mxu0  ;;  %v1068_v16 = vpop.f32.mrf.mxu1 }
 0x2e5   : > { %v1029_v17 = vpop.f32.mrf.mxu2  ;;  %v1042_v18 = vpop.f32.mrf.mxu3 }
 0x2e6   : > { %v1497_v19 = vmul.f32 -1.442695, %v1067_v14 }
 0x2e7   : > { %v1598_v20 = vpop.eup %1597 }
 0x2e8   : > { %v1079_v21 = vmul.f32 %v1598_v20, %v1076_v11  ;;  %1599 = vpow2.f32 %v1497_v19  ;;  %vm1084_vm9 = vweird.f32 %v1598_v20 }
 0x2e9   : > { %vm1085_vm11 = vmor %vm1083_vm10, %vm1084_vm9 }
 0x2ea   : > { %v1080_v22 = vsub.f32 1.0, %v1079_v21 }
 0x2ec   : > { %v1081_v24 = vmul.f32 %v1598_v20, %v1080_v22 }
 0x2ee   : > { %v1600_v26 = vpop.eup %1599  ;;  %v1082_v27 = vadd.f32 %v1598_v20, %v1081_v24 }
 0x2ef   : > { %v1077_v29 = vadd.f32 1.0, %v1600_v26 }
 0x2f0   : > { %v1086_v30 = vsel %vm1085_vm11, %v1598_v20, %v1082_v27 }
 0x2f1   : > { %v1091_v31 = vsel %vm1088_vm12, %v1090_v28, %v1086_v30  ;;  %1601 = vrcp.f32 %v1077_v29  ;;  %v1104_v40 = vand.u32 2147483648, %v1077_v29  ;;  %vm1098_vm14 = vweird.f32 %v1077_v29 }
 0x2f2   : > { %v1116_v32 = vperm.slane %v1091_v31, 0 }
 0x2f4   : > { %v1118_v33 = vmul.f32 %v1116_v32, %v2102_v45  ;;  %v1120_v34 = vmul.f32 %v1116_v32, %v2129_v57  ;;  %v1122_v35 = vmul.f32 %v1116_v32, %v2123_v55  ;;  %v1124_v36 = vmul.f32 %v1116_v32, %v2117_v51 }
 0x2f5   : > { %v1102_v45 = vand.u32 2147483647, %v1077_v29  ;;  %v1105_v55 = vor.u32 1.1754944e-38, %v1104_v40 }
 0x2f6   : > { %1126 = vst [vmem:[%s2167_s18] sm:$0xff] %v1118_v33 }
 0x2f7   : > { %v1602_v37 = vpop.eup %1601  ;;  %1128 = vst [vmem:[%s2167_s18 + $0x10] sm:$0xff] %v1120_v34  ;;  %vm1103_vm0 = vcmp.eq.f32.partialorder %v1102_v45, 8.507059e+37 }
 0x2f8   : > { %1130 = vst [vmem:[%s2167_s18 + $0x20] sm:$0xff] %v1122_v35  ;;  %v1094_v38 = vmul.f32 %v1602_v37, %v1077_v29  ;;  %vm1099_vm13 = vweird.f32 %v1602_v37 }
 0x2f9   : > { %1132 = vst [vmem:[%s2167_s18 + $0x30] sm:$0xff] %v1124_v36  ;;  %vm1100_vm15 = vmor %vm1098_vm14, %vm1099_vm13 }
 0x2fa   : > { %v1095_v39 = vsub.f32 1.0, %v1094_v38 }
 0x2fc   : > { %v1096_v41 = vmul.f32 %v1602_v37, %v1095_v39 }
 0x2fe   : > { %v1097_v57 = vadd.f32 %v1602_v37, %v1096_v41 }
 0x300   : > { %v1101_v51 = vsel %vm1100_vm15, %v1602_v37, %v1097_v57 }
 0x301   : > { %v1106_v42 = vsel %vm1103_vm0, %v1105_v55, %v1101_v51 }
 0x302   : > { %v1117_v43 = vperm.slane %v1106_v42, 0 }
 0x304   : > { %v1119_v44 = vmul.f32 %v1117_v43, %v2114_v50  ;;  %v1121_v46 = vmul.f32 %v1117_v43, %v2132_v1  ;;  %v1123_v47 = vmul.f32 %v1117_v43, %v2126_v56  ;;  %v1125_v48 = vmul.f32 %v1117_v43, %v2120_v0 }
 0x306   : > { %1127 = vst [vmem:[%s2167_s18 + $0x8] sm:$0xff] %v1119_v44 }
 0x307   : > { %1129 = vst [vmem:[%s2167_s18 + $0x18] sm:$0xff] %v1121_v46 }
 0x308   : > { %1131 = vst [vmem:[%s2167_s18 + $0x28] sm:$0xff] %v1123_v47 }
 0x309   : > { %1133 = vst [vmem:[%s2167_s18 + $0x38] sm:$0xff] %v1125_v48 }
 0x30a PF: > { %s18_s26 = sadd.s32 1, %s1609_s26  }
 0x30b   : > { %p15_p4 = scmp.ge.s32.totalorder %s18_s26, 4  }
 0x30d   :  { %17 = sbr.rel (!%p15_p4) target bundleno = 2 (0x2), region = 78 }

</bundles_post_ra>
